<compile_context>
chip_gen: v5e
topology: v5e:2x2
jax: 0.10.0
libtpu: 0.0.40
codegen_flags: <defaults>
</compile_context>

<pallas_src>
import functools
import math

import jax
import jax.numpy as jnp
from jax.experimental import pallas as pl
from jax.experimental.pallas import tpu as pltpu


def _ln_math(x, a, b, eps, features):
    # Two-pass, centered variance: matches torch's mean/std computation and is
    # robust to a large DC offset in the activations (no catastrophic
    # cancellation). Exact divide (no approx reciprocal) for parity with torch.
    n = jnp.float32(features)
    mean = jnp.sum(x, axis=-1, keepdims=True) / n
    centered = x - mean
    # Unbiased variance (N-1), matching torch.std's default.
    # NOTE: features == 1 divides by zero, exactly like torch.std with 0 dof.
    var = jnp.sum(centered * centered, axis=-1, keepdims=True) / jnp.float32(features - 1)
    std = jnp.sqrt(var)
    return a * (centered / (std + jnp.float32(eps))) + b


def _ln_kernel(x_ref, a_ref, b_ref, o_ref, *, eps, features):
    """LayerNorm over the last dim of a (tile_rows, features) tile."""
    x = x_ref[...].astype(jnp.float32)
    a = a_ref[...].astype(jnp.float32)
    b = b_ref[...].astype(jnp.float32)
    o_ref[...] = _ln_math(x, a, b, eps, features).astype(o_ref.dtype)


def _ln_residual_kernel(x_ref, r_ref, a_ref, b_ref, o_ref, *, eps, features):
    """Fused residual-add + LayerNorm (saves one HBM round-trip of the activations)."""
    x = x_ref[...].astype(jnp.float32) + r_ref[...].astype(jnp.float32)
    a = a_ref[...].astype(jnp.float32)
    b = b_ref[...].astype(jnp.float32)
    o_ref[...] = _ln_math(x, a, b, eps, features).astype(o_ref.dtype)


def _round_up(x, m):
    return (x + m - 1) // m * m


def _default_vmem_limit_bytes():
    """~50% of physical VMEM on 64 MiB chips (v7x), ~60% on 128 MiB chips (v5e/v6e)."""
    cap = None
    try:
        info = pltpu.get_tpu_info()
        cap = getattr(info, "vmem_capacity_bytes", None)
    except Exception:
        cap = None
    if not cap:
        cap = 64 * 1024 * 1024  # conservative (v7x-sized) assumption
    frac = 0.5 if cap <= 64 * 1024 * 1024 else 0.6
    return int(cap * frac)


def _choose_tile_rows(rows, features, itemsize, vmem_limit_bytes,
                      num_row_streams, max_tile_rows=1024):
    """Largest row tile whose double-buffered streams + f32 working set fit the budget."""
    # Sublane packing alignment for the I/O dtype: 8 (f32), 16 (bf16), 32 (int8/fp8).
    align = max(8, (8 * 4) // max(itemsize, 1))
    budget = int(vmem_limit_bytes * 0.6)          # headroom for params / compiler scratch
    # Each row-tiled input stream and the output stream is double-buffered,
    # plus the in-kernel f32 upcast temporaries (inputs + centered + result).
    io_bytes_per_row = 2 * (num_row_streams + 1) * features * itemsize
    compute_bytes_per_row = (num_row_streams + 2) * features * 4
    bytes_per_row = io_bytes_per_row + compute_bytes_per_row
    t = budget // max(bytes_per_row, 1)
    t = min(t, max_tile_rows, _round_up(rows, align))
    # Keep >= ~4 grid blocks when there are enough rows, so both v7x TensorCores
    # get work under dimension_semantics=("parallel",) and the double-buffer
    # pipeline has something to overlap.
    min_blocks = 4
    if rows >= min_blocks * align:
        cap = max(align, (rows // min_blocks // align) * align)
        t = min(t, cap)
    t = max(align, (t // align) * align)
    return int(t)


def layer_norm(x, a_2, b_2, eps=1e-6, residual=None, tile_rows=None,
               vmem_limit_bytes=None):
    """LayerNorm over the last dim; optionally fused with a residual add (x + residual)."""
    orig_shape = x.shape
    features = orig_shape[-1]
    rows = math.prod(orig_shape[:-1]) if len(orig_shape) > 1 else 1
    itemsize = jnp.dtype(x.dtype).itemsize

    if vmem_limit_bytes is None:
        vmem_limit_bytes = _default_vmem_limit_bytes()

    num_row_streams = 1 if residual is None else 2
    if tile_rows is None:
        tile_rows = _choose_tile_rows(rows, features, itemsize, vmem_limit_bytes,
                                      num_row_streams)

    x2 = x.reshape(rows, features)
    a2 = a_2.reshape(1, features)
    b2 = b_2.reshape(1, features)
    r2 = residual.reshape(rows, features) if residual is not None else None

    # Ragged tail: no host-side pad/slice. Pallas masks the partial tail block's
    # stores; the per-row feature reduction keeps garbage tail rows isolated.
    grid = (pl.cdiv(rows, tile_rows),)
    row_spec = pl.BlockSpec((tile_rows, features), lambda i: (i, 0))
    param_spec = pl.BlockSpec((1, features), lambda i: (0, 0))  # resident across steps

    if r2 is None:
        kernel = functools.partial(_ln_kernel, eps=eps, features=features)
        in_specs = [row_spec, param_spec, param_spec]
        operands = (x2, a2, b2)
    else:
        kernel = functools.partial(_ln_residual_kernel, eps=eps, features=features)
        in_specs = [row_spec, row_spec, param_spec, param_spec]
        operands = (x2, r2, a2, b2)

    out = pl.pallas_call(
        kernel,
        out_shape=jax.ShapeDtypeStruct((rows, features), x.dtype),
        grid_spec=pl.GridSpec(grid=grid, in_specs=in_specs, out_specs=row_spec),
        compiler_params=pltpu.CompilerParams(
            dimension_semantics=("parallel",),   # rows are independent; shard across TCs
            vmem_limit_bytes=int(vmem_limit_bytes),
        ),
    )(*operands)

    return out.reshape(orig_shape)


if __name__ == "__main__":
    key = jax.random.PRNGKey(0)
    kx, kr, ka, kb = jax.random.split(key, 4)

    def ref_ln(x, a_2, b_2, eps):
        f = x.shape[-1]
        mean = jnp.mean(x, axis=-1, keepdims=True)
        var = jnp.sum((x - mean) ** 2, axis=-1, keepdims=True) / (f - 1)  # unbiased
        return a_2 * (x - mean) / (jnp.sqrt(var) + eps) + b_2

    eps = 1e-6
    tol = dict(atol=1e-3, rtol=1e-3)

    # 1) Encoder.norm on a shape consistent with the module: (batch, seq, d_model)
    batch, seq, features = 2, 8, 32
    x = jax.random.normal(kx, (batch, seq, features), dtype=jnp.float32)
    a_2 = jnp.ones((features,), dtype=jnp.float32)   # nn.Parameter(torch.ones(features))
    b_2 = jnp.zeros((features,), dtype=jnp.float32)  # nn.Parameter(torch.zeros(features))
    out = jax.block_until_ready(layer_norm(x, a_2, b_2, eps=eps))
    assert out.shape == x.shape and out.dtype == x.dtype
    assert jnp.allclose(out, ref_ln(x, a_2, b_2, eps), **tol), "LN mismatch vs reference"

    # 2) Ragged row count (rows=15 not a multiple of the tile), lane-dense features,
    #    fused residual-add path, non-trivial params.
    batch2, seq2, f2 = 3, 5, 128
    x2 = jax.random.normal(kx, (batch2, seq2, f2), dtype=jnp.float32)
    r2 = jax.random.normal(kr, (batch2, seq2, f2), dtype=jnp.float32)
    a2 = jax.random.normal(ka, (f2,), dtype=jnp.float32)
    b2 = jax.random.normal(kb, (f2,), dtype=jnp.float32)
    out2 = jax.block_until_ready(
        layer_norm(x2, a2, b2, eps=eps, residual=r2, tile_rows=8))
    assert out2.shape == x2.shape and out2.dtype == x2.dtype
    assert jnp.allclose(out2, ref_ln(x2 + r2, a2, b2, eps), **tol), "fused LN mismatch"

    print("KERNEL_OK")
</pallas_src>

<mosaic_0001>
module attributes {stable_mosaic.version = 11 : i64} {
  func.func @_ln_kernel(%arg0: i32, %arg1: memref<16x32xf32, #tpu.memory_space<vmem>>, %arg2: memref<1x32xf32, #tpu.memory_space<vmem>>, %arg3: memref<1x32xf32, #tpu.memory_space<vmem>>, %arg4: memref<16x32xf32, #tpu.memory_space<vmem>>) attributes {dimension_semantics = [#tpu.dimension_semantics<parallel>], iteration_bounds = array<i64: 1>, scalar_prefetch = 0 : i64, scratch_operands = 0 : i64, tpu.core_type = #tpu.core_type<tc>, window_params = [{transform_indices = @transform_0, window_bounds = array<i64: 16, 32>}, {pipeline_mode = #tpu.pipeline_mode<synchronous>, transform_indices = @transform_1, window_bounds = array<i64: 1, 32>}, {pipeline_mode = #tpu.pipeline_mode<synchronous>, transform_indices = @transform_2, window_bounds = array<i64: 1, 32>}, {transform_indices = @transform_3, window_bounds = array<i64: 16, 32>}]} {
    %c0 = arith.constant 0 : index
    %c0_0 = arith.constant 0 : index
    %0 = vector.load %arg1[%c0, %c0_0] : memref<16x32xf32, #tpu.memory_space<vmem>>, vector<16x32xf32>
    %c0_1 = arith.constant 0 : index
    %c0_2 = arith.constant 0 : index
    %1 = vector.load %arg2[%c0_1, %c0_2] : memref<1x32xf32, #tpu.memory_space<vmem>>, vector<1x32xf32>
    %c0_3 = arith.constant 0 : index
    %c0_4 = arith.constant 0 : index
    %2 = vector.load %arg3[%c0_3, %c0_4] : memref<1x32xf32, #tpu.memory_space<vmem>>, vector<1x32xf32>
    %cst = arith.constant dense<0.000000e+00> : vector<16xf32>
    %3 = vector.multi_reduction <add>, %0, %cst [1] : vector<16x32xf32> to vector<16xf32>
    %4 = vector.shape_cast %3 : vector<16xf32> to vector<16x1xf32>
    %cst_5 = arith.constant 3.200000e+01 : f32
    %5 = vector.broadcast %cst_5 : f32 to vector<16x1xf32>
    %6 = arith.divf %4, %5 : vector<16x1xf32>
    %7 = vector.broadcast %6 : vector<16x1xf32> to vector<16x32xf32>
    %8 = arith.subf %0, %7 : vector<16x32xf32>
    %9 = arith.mulf %8, %8 : vector<16x32xf32>
    %cst_6 = arith.constant dense<0.000000e+00> : vector<16xf32>
    %10 = vector.multi_reduction <add>, %9, %cst_6 [1] : vector<16x32xf32> to vector<16xf32>
    %11 = vector.shape_cast %10 : vector<16xf32> to vector<16x1xf32>
    %cst_7 = arith.constant 3.100000e+01 : f32
    %12 = vector.broadcast %cst_7 : f32 to vector<16x1xf32>
    %13 = arith.divf %11, %12 : vector<16x1xf32>
    %14 = math.sqrt %13 : vector<16x1xf32>
    %cst_8 = arith.constant 9.99999997E-7 : f32
    %15 = vector.broadcast %cst_8 : f32 to vector<16x1xf32>
    %16 = arith.addf %14, %15 : vector<16x1xf32>
    %17 = vector.broadcast %16 : vector<16x1xf32> to vector<16x32xf32>
    %18 = arith.divf %8, %17 : vector<16x32xf32>
    %19 = vector.broadcast %1 : vector<1x32xf32> to vector<16x32xf32>
    %20 = arith.mulf %19, %18 : vector<16x32xf32>
    %21 = vector.broadcast %2 : vector<1x32xf32> to vector<16x32xf32>
    %22 = arith.addf %20, %21 : vector<16x32xf32>
    %c0_9 = arith.constant 0 : index
    %c0_10 = arith.constant 0 : index
    %23 = vector.load %arg4[%c0_9, %c0_10] : memref<16x32xf32, #tpu.memory_space<vmem>>, vector<16x32xf32>
    tpu.vector_store %arg4[%c0_9, %c0_10], %22 {strides = array<i32>} : memref<16x32xf32, #tpu.memory_space<vmem>>, vector<16x32xf32>,
    return
  }
  func.func @transform_0(%arg0: i32) -> (i32, i32) {
    %c0_i32 = arith.constant 0 : i32
    %c0_i32_0 = arith.constant 0 : i32
    return %arg0, %c0_i32 : i32, i32
  }
  func.func @transform_1(%arg0: i32) -> (i32, i32) {
    %c0_i32 = arith.constant 0 : i32
    %c0_i32_0 = arith.constant 0 : i32
    %c0_i32_1 = arith.constant 0 : i32
    return %c0_i32, %c0_i32_0 : i32, i32
  }
  func.func @transform_2(%arg0: i32) -> (i32, i32) {
    %c0_i32 = arith.constant 0 : i32
    %c0_i32_0 = arith.constant 0 : i32
    %c0_i32_1 = arith.constant 0 : i32
    return %c0_i32, %c0_i32_0 : i32, i32
  }
  func.func @transform_3(%arg0: i32) -> (i32, i32) {
    %c0_i32 = arith.constant 0 : i32
    %c0_i32_0 = arith.constant 0 : i32
    return %arg0, %c0_i32 : i32, i32
  }
}

</mosaic_0001>

<bundles_post_ra>
// kernel: tpu_custom_call.1
= control target key start
LH: loop header
LB: loop body
LE: loop exit
PB: predicated region body
PF: predicated region fallthrough
CT: control target
= control target key end

     0   :  { %8 = vsyncpa [#allocation3], 0  ;;  %s332_s0 = inlined_call_operand.hbm [shape: f32[16,32], index: 0, kind: input, shape index: {}]   ;;  %s333_s1 = inlined_call_operand.hbm [shape: f32[1,32], index: 1, kind: input, shape index: {}]   ;;  %s334_s2 = inlined_call_operand.vmem [shape: f32[1,32], index: 2, kind: input, shape index: {}]   ;;  %s335_s3 = inlined_call_operand.hbm [shape: f32[16,32], index: 3, kind: output, shape index: {}]  }
   0x1   :  { %9 = vsyncpa [#allocation6], 0 }
   0x2   :  { %10 = vsyncpa [#allocation4], 0  ;;  %s15_s14 = sshll.u32 %s332_s0, 4  ;;  %s271_s15 = smov [#allocation2]   ;;  %s16_s14 = int_to_ptr.hbm [resolvable:$true] %s15_s14 }
   0x3   :  { %s17_s16 = sshll.u32 %s271_s15, 4  ;;  %s29_s19 = sshll.u32 %s333_s1, 4  ;;  %s18_s16 = int_to_ptr.vmem [resolvable:$true] %s17_s16  ;;  %s30_s19 = int_to_ptr.hbm [resolvable:$true] %s29_s19 }
   0x4   :  { %s272_s20 = smov 128   ;;  %s273_s21 = smov 8  }
   0x5   :  { %23 = dma.hbm_to_vmem [thread:$0]  %s16_s14, 256, %s18_s16, [#allocation3], %s272_s20, %s272_s20, %s273_s21  }
   0x6   :  { %s274_s22 = smov [#allocation5]  }
   0x7   :  { %s31_s23 = sshll.u32 %s274_s22, 4  ;;  %s32_s23 = int_to_ptr.vmem [resolvable:$true] %s31_s23 }
   0x8   :  { %34 = dma.hbm_to_vmem [thread:$0]  %s30_s19, 16, %s32_s23, [#allocation6]  }
   0x9   :  { %265 = dma.done.wait [#allocation3], 256  }
   0xa   :  { %266 = vsyncadd [#allocation3], 4294967040 }
   0xb   :  { %267 = dma.done.wait [#allocation6], 16  }
   0xc   :  { %268 = vsyncadd [#allocation6], 4294967280  ;;  %vm49_vm0 = vcmask 261120   ;;  %v45_v0 = vld [vmem:[#allocation2] sm:$0xff]  ;;  %v46_v2 = vld [vmem:[#allocation2 + $0x8] sm:$0xff]  ;;  %v275_v4 = vmov 32.0  }
   0xd   :  { %v50_v1 = vsel %vm49_vm0, %v45_v0, 0.0  ;;  %v53_v3 = vsel %vm49_vm0, %v46_v2, 0.0  ;;  %181 = vrcp.f32 %v275_v4  ;;  %v276_v21 = vmov 31.0   ;;  %s277_s24 = smov [#allocation7]   ;;  %s158_s27 = sshll.u32 %s335_s3, 4  ;;  %s159_s27 = int_to_ptr.hbm [resolvable:$true] %s158_s27 }
   0xe   :  { %51 = vadd.xlane.f32.xlu0 %v50_v1  ;;  %183 = vrcp.f32 %v276_v21  ;;  %v179_v1 = vld [vmem:[#allocation5] ss:$0 sm:$0xff]  ;;  %s156_s25 = sshll.u32 %s277_s24, 4  ;;  %s157_s25 = int_to_ptr.vmem [resolvable:$true] %s156_s25 }
  0x13   :  { %v182_v5 = vpop.eup %181 }
  0x14   :  { %v57_v6 = vmul.f32 32.0, %v182_v5  ;;  %vm61_vm1 = vweird.f32 %v182_v5  ;;  %v184_v22 = vpop.eup %183 }
  0x15   :  { %v76_v23 = vmul.f32 31.0, %v184_v22  ;;  %vm80_vm2 = vweird.f32 %v184_v22 }
  0x16   :  { %54 = vadd.xlane.f32.xlu0 %v53_v3  ;;  %v58_v7 = vsub.f32 1.0, %v57_v6 }
  0x17   :  { %v77_v24 = vsub.f32 1.0, %v76_v23 }
  0x18   :  { %v59_v8 = vmul.f32 %v182_v5, %v58_v7 }
  0x19   :  { %v78_v25 = vmul.f32 %v184_v22, %v77_v24 }
  0x1a   :  { %v60_v9 = vadd.f32 %v182_v5, %v59_v8 }
  0x1b   :  { %v79_v26 = vadd.f32 %v184_v22, %v78_v25 }
  0x1c   :  { %v62_v10 = vsel %vm61_vm1, %v182_v5, %v60_v9  ;;  %v180_v5 = vld [vmem:[%s334_s2] ss:$0 sm:$0xff] }
  0x1d   :  { %v81_v27 = vsel %vm80_vm2, %v184_v22, %v79_v26 }
  0x81   :  { %v52_v11 = vpop.xlane.xlu0 %51 }
  0x82   :  { %v63_v12 = vmul.f32 %v62_v10, %v52_v11 }
  0x84   :  { %v309_v13 = vsub.f32 %v45_v0, %v63_v12 }
  0x86   :  { %v67_v14 = vmul.f32 %v309_v13, %v309_v13 }
  0x88   :  { %v69_v15 = vsel %vm49_vm0, %v67_v14, 0.0 }
  0x89   :  { %70 = vadd.xlane.f32.xlu1 %v69_v15  ;;  %v55_v16 = vpop.xlane.xlu0 %54 }
  0x8a   :  { %v64_v17 = vmul.f32 %v62_v10, %v55_v16 }
  0x8c   :  { %v314_v18 = vsub.f32 %v46_v2, %v64_v17 }
  0x8e   :  { %v68_v19 = vmul.f32 %v314_v18, %v314_v18 }
  0x90   :  { %v72_v20 = vsel %vm49_vm0, %v68_v19, 0.0 }
  0x91   :  { %73 = vadd.xlane.f32.xlu1 %v72_v20 }
  0xfc   :  { %v71_v28 = vpop.xlane.xlu1 %70 }
  0xfd   :  { %v82_v29 = vmul.f32 %v81_v27, %v71_v28 }
  0xff   :  { %185 = vrsqrt.f32 %v82_v29  ;;  %vm91_vm3 = vcmp.eq.f32.partialorder %v82_v29, inf  ;;  %v94_v42 = vand.u32 2147483648, %v82_v29  ;;  %vm93_vm4 = vcmp.eq.f32.partialorder %v82_v29, 0.0 }
 0x104   :  { %v74_v30 = vpop.xlane.xlu1 %73 }
 0x105   :  { %v186_v31 = vpop.eup %185  ;;  %v83_v32 = vmul.f32 %v81_v27, %v74_v30 }
 0x106   :  { %v85_v33 = vmul.f32 %v186_v31, %v82_v29 }
 0x107   :  { %187 = vrsqrt.f32 %v83_v32  ;;  %vm103_vm5 = vcmp.eq.f32.partialorder %v83_v32, inf  ;;  %v106_v50 = vand.u32 2147483648, %v83_v32  ;;  %vm105_vm6 = vcmp.eq.f32.partialorder %v83_v32, 0.0 }
 0x108   :  { %v86_v34 = vmul.f32 %v186_v31, %v85_v33 }
 0x10a   :  { %v87_v35 = vmul.f32 0.5, %v86_v34 }
 0x10c   :  { %v88_v36 = vsub.f32 1.5, %v87_v35 }
 0x10d   :  { %v188_v37 = vpop.eup %187 }
 0x10e   :  { %v89_v38 = vmul.f32 %v186_v31, %v88_v36  ;;  %v97_v39 = vmul.f32 %v188_v37, %v83_v32 }
 0x110   :  { %v90_v40 = vmul.f32 %v89_v38, %v82_v29  ;;  %v98_v41 = vmul.f32 %v188_v37, %v97_v39 }
 0x112   :  { %v92_v43 = vsel %vm91_vm3, %v82_v29, %v90_v40  ;;  %v99_v44 = vmul.f32 0.5, %v98_v41 }
 0x113   :  { %v95_v45 = vsel %vm93_vm4, %v94_v42, %v92_v43 }
 0x114   :  { %v108_v46 = vadd.f32 1e-06, %v95_v45  ;;  %v100_v47 = vsub.f32 1.5, %v99_v44 }
 0x116   :  { %189 = vrcp.f32 %v108_v46  ;;  %v101_v48 = vmul.f32 %v188_v37, %v100_v47  ;;  %v121_v57 = vand.u32 2147483648, %v108_v46  ;;  %v119_v59 = vand.u32 2147483647, %v108_v46 }
 0x117   :  { %vm115_vm8 = vweird.f32 %v108_v46 }
 0x118   :  { %v102_v49 = vmul.f32 %v101_v48, %v83_v32  ;;  %v122_v62 = vor.u32 1.1754944e-38, %v121_v57  ;;  %vm120_vm10 = vcmp.eq.f32.partialorder %v119_v59, 8.507059e+37 }
 0x11a   :  { %v104_v51 = vsel %vm103_vm5, %v83_v32, %v102_v49 }
 0x11b   :  { %v107_v52 = vsel %vm105_vm6, %v106_v50, %v104_v51 }
 0x11c   :  { %v190_v53 = vpop.eup %189  ;;  %v109_v54 = vadd.f32 1e-06, %v107_v52 }
 0x11d   :  { %v111_v55 = vmul.f32 %v190_v53, %v108_v46  ;;  %vm116_vm7 = vweird.f32 %v190_v53 }
 0x11e   :  { %191 = vrcp.f32 %v109_v54  ;;  %vm117_vm9 = vmor %vm115_vm8, %vm116_vm7  ;;  %v136_v6 = vand.u32 2147483648, %v109_v54  ;;  %v134_v8 = vand.u32 2147483647, %v109_v54  ;;  %vm130_vm12 = vweird.f32 %v109_v54 }
 0x11f   :  { %v112_v56 = vsub.f32 1.0, %v111_v55 }
 0x120   :  { %v137_v12 = vor.u32 1.1754944e-38, %v136_v6  ;;  %vm135_vm14 = vcmp.eq.f32.partialorder %v134_v8, 8.507059e+37 }
 0x121   :  { %v113_v58 = vmul.f32 %v190_v53, %v112_v56 }
 0x123   :  { %v114_v60 = vadd.f32 %v190_v53, %v113_v58 }
 0x124   :  { %v192_v61 = vpop.eup %191 }
 0x125   :  { %v118_v63 = vsel %vm117_vm9, %v190_v53, %v114_v60  ;;  %v126_v0 = vmul.f32 %v192_v61, %v109_v54  ;;  %vm131_vm11 = vweird.f32 %v192_v61 }
 0x126   :  { %v123_v2 = vsel %vm120_vm10, %v122_v62, %v118_v63  ;;  %vm132_vm13 = vmor %vm130_vm12, %vm131_vm11 }
 0x127   :  { %v124_v3 = vmul.f32 %v123_v2, %v309_v13  ;;  %v127_v4 = vsub.f32 1.0, %v126_v0 }
 0x129   :  { %v128_v7 = vmul.f32 %v192_v61, %v127_v4  ;;  %v143_v9 = vmul.f32 %v179_v1, %v124_v3 }
 0x12b   :  { %v129_v10 = vadd.f32 %v192_v61, %v128_v7  ;;  %v148_v11 = vadd.f32 %v180_v5, %v143_v9 }
 0x12d   :  { %v133_v14 = vsel %vm132_vm13, %v192_v61, %v129_v10  ;;  %150 = vst.msk [vmem:[#allocation7] sm:$0xff] %vm49_vm0, %v148_v11 }
 0x12e   :  { %v138_v13 = vsel %vm135_vm14, %v137_v12, %v133_v14 }
 0x12f   :  { %v139_v15 = vmul.f32 %v138_v13, %v314_v18 }
 0x131   :  { %v144_v16 = vmul.f32 %v179_v1, %v139_v15 }
 0x133   :  { %v149_v17 = vadd.f32 %v180_v5, %v144_v16 }
 0x135   :  { %151 = vst.msk [vmem:[#allocation7 + $0x8] sm:$0xff] %vm49_vm0, %v149_v17 }
 0x136   :  { %164 = dma.vmem_to_hbm [thread:$0]  %s157_s25, 256, %s159_s27, [#allocation4], %s272_s20, %s272_s20, %s273_s21  }
 0x137   :  { %269 = dma.done.wait [#allocation4], 256  }
 0x138   :  { %270 = vsyncadd [#allocation4], 4294967040 }
 0x139   :  { %169 = vsyncpa [#allocation3], 1 }
 0x13a   :  { %170 = vsyncpa [#allocation6], 1 }
 0x13b   :  { %171 = vsyncpa [#allocation4], 1 }

</bundles_post_ra>
